<compile_context>
chip_gen: v5e
topology: v5e:2x2
jax: 0.10.0
libtpu: 0.0.40
codegen_flags: <defaults>
</compile_context>

<pallas_src>
import functools

import numpy as np
import jax
import jax.numpy as jnp
from jax import lax
from jax.experimental import pallas as pl
from jax.experimental.pallas import tpu as pltpu


def _round_up(x, m):
    return ((x + m - 1) // m) * m


@functools.lru_cache(maxsize=None)
def _tpu_config():
    """Returns (vmem_limit_bytes, block_budget_bytes, multi_core) per generation."""
    vmem_cap = 128 << 20
    try:
        info = pltpu.get_tpu_info()
        vmem_cap = int(getattr(info, "vmem_capacity_bytes", vmem_cap) or vmem_cap)
    except Exception:
        pass  # non-TPU / interpret fallback: conservative defaults below
    if vmem_cap <= (64 << 20):
        # v7x-class: 64 MiB physical VMEM, 2 TensorCores per chip.
        vmem_limit, multi_core = 32 << 20, True
    else:
        # v5e / v6e: 128 MiB physical VMEM, single TensorCore.
        vmem_limit, multi_core = 64 << 20, False
    # Keep (double-buffered blocks + scratch + temps) ~ half the scoped limit.
    return vmem_limit, vmem_limit // 2, multi_core


def _pick_batch_block(n, per_image_bytes, block_budget, multi_core, max_nb=None):
    """Largest nb the VMEM budget allows (no divisor requirement — batch is padded)."""
    nb = max(1, int(block_budget // max(per_image_bytes, 1)))
    nb = min(nb, n)
    if max_nb is not None:
        nb = min(nb, max_nb)
    if multi_core and n >= 2:
        # Keep >= 2 grid steps ONLY where a second TensorCore can take them.
        nb = min(nb, -(-n // 2))
    return max(int(nb), 1)


def _zero_conv2d_kernel(x_ref, w_ref, b_ref, o_ref, y_ref, *, cout, wp, guard):
    """One grid step = `nb` batch images concatenated along the lane axis.

    x_ref : (Cin, nb*S)     padded input, per-image flattened spatial on lanes
    w_ref : (9*Cout, Cin)   row = tap*Cout + out_ch, exp(3*log_scale) folded in
    b_ref : (Cout, 1)       bias * exp(3*log_scale)
    o_ref : (Cout, nb*S)    output on the same padded/flattened lane grid
    y_ref : (9*Cout, nb*S)  f32 VMEM scratch holding all per-tap partial products
    """
    n_lanes = x_ref.shape[1]
    L = n_lanes - 2 * guard

    # (1) ONE wide MXU matmul per grid step: all 9 taps (stacked on rows) times
    #     every pixel of every image in the block (lanes).  No im2col anywhere.
    y_ref[...] = jnp.dot(w_ref[...], x_ref[...],
                         preferred_element_type=jnp.float32)

    # (2) Combine the 9 tap slabs at their static spatial lane offsets.  Each
    #     slab is only Cout rows, so this moves ~Cout/Cin of the input bytes.
    acc = y_ref[0:cout, 0:L]                       # tap (kh=0, kw=0): offset 0
    for t in range(1, 9):
        kh, kw = divmod(t, 3)
        d = kh * wp + kw                           # static lane offset of tap t
        acc = acc + y_ref[t * cout:(t + 1) * cout, d:d + L]
    out_core = (acc + b_ref[...]).astype(o_ref.dtype)   # bias added once/step

    # (3) Zero the (wrapper-discarded) border lanes, then one wide store of the
    #     valid region.  Lane layout mirrors the input -> dense writeback DMAs.
    o_ref[...] = jnp.zeros_like(o_ref)
    o_ref[:, guard:guard + L] = out_core


@functools.partial(jax.jit, static_argnames=("compute_dtype", "max_batch_block"))
def zero_conv2d(x_nchw, weight, bias, log_scale, *, compute_dtype=jnp.float32,
                max_batch_block=None):
    """ZeroConv2d forward.

    x_nchw:    (N, Cin, H, W)     float32
    weight:    (3, 3, Cin, Cout)  float32 (HWIO)
    bias:      (Cout,)            float32
    log_scale: (Cout,)            float32 (PyTorch (1, Cout, 1, 1) squeezed)
    compute_dtype: dtype the input & weights are streamed/multiplied in.
        jnp.float32 (default, exact) or jnp.bfloat16 (halves HBM bytes,
        full-rate MXU; accumulation stays f32).
    returns:   (N, Cout, H, W)    x_nchw.dtype
    """
    N, Cin, H, W = x_nchw.shape
    Cout = weight.shape[-1]
    Hp, Wp = H + 2, W + 2
    HpWp = Hp * Wp
    S = _round_up(HpWp, 128)          # per-image lane span (128-aligned)
    guard = Wp + 1                    # max |tap offset| on the flattened lane axis

    itemsize = np.dtype(compute_dtype).itemsize
    vmem_limit, block_budget, multi_core = _tpu_config()
    # Per-image VMEM: double-buffered in/out blocks + matmul operand copy +
    # (9*Cout)-row scratch + accumulator temps.
    per_image = 3 * Cin * S * itemsize + 13 * Cout * S * 4
    nb = _pick_batch_block(N, per_image, block_budget, multi_core, max_batch_block)
    n_pad = _round_up(N, nb)          # batch padded up to the block (no divisor rule)
    grid = (n_pad // nb,)
    nbS = nb * S

    # --- parameters: fold exp(3*log_scale) into weight & bias (exact) ----------
    scale = jnp.exp(log_scale.reshape(-1).astype(jnp.float32) * 3.0)          # (Cout,)
    w9 = (jnp.transpose(weight.astype(jnp.float32), (0, 1, 3, 2))             # (3,3,Cout,Cin)
          * scale[None, None, :, None])
    w9 = w9.reshape(9 * Cout, Cin).astype(compute_dtype)                      # row = tap*Cout + o
    b2 = (bias.astype(jnp.float32) * scale).reshape(Cout, 1)

    # --- input: pad(H,W with 1.0) -> flatten spatial -> 128-pad -> (Cin, Npad*S)
    # One fused XLA pass over x (this wrapper is jitted); never 9x-inflated.
    x_pad = jnp.pad(x_nchw, ((0, n_pad - N), (0, 0), (1, 1), (1, 1)),
                    constant_values=1.0)
    x_flat = jnp.pad(x_pad.reshape(n_pad, Cin, HpWp),
                     ((0, 0), (0, 0), (0, S - HpWp)))
    x2 = jnp.transpose(x_flat, (1, 0, 2)).reshape(Cin, n_pad * S).astype(compute_dtype)

    kernel = functools.partial(_zero_conv2d_kernel, cout=Cout, wp=Wp, guard=guard)

    out2 = pl.pallas_call(
        kernel,
        out_shape=jax.ShapeDtypeStruct((Cout, n_pad * S), x_nchw.dtype),
        grid=grid,
        in_specs=[
            pl.BlockSpec((Cin, nbS), lambda m: (0, m)),          # streamed input
            pl.BlockSpec((9 * Cout, Cin), lambda m: (0, 0)),     # stacked tap weights
            pl.BlockSpec((Cout, 1), lambda m: (0, 0)),           # scaled bias
        ],
        out_specs=pl.BlockSpec((Cout, nbS), lambda m: (0, m)),
        scratch_shapes=[pltpu.VMEM((9 * Cout, nbS), jnp.float32)],
        compiler_params=pltpu.CompilerParams(
            dimension_semantics=("parallel",),
            vmem_limit_bytes=vmem_limit),
    )(x2, w9, b2)

    # --- un-pad: drop lane padding + halo positions, restore NCHW --------------
    out = out2.reshape(Cout, n_pad, S)[:, :N, :HpWp].reshape(Cout, N, Hp, Wp)
    out = out[:, :, 1:H + 1, 1:W + 1]
    return jnp.transpose(out, (1, 0, 2, 3))


def _reference(x_nchw, weight, bias, log_scale):
    """Pure-JAX reference (lax conv) for correctness check."""
    x_pad = jnp.pad(x_nchw, ((0, 0), (0, 0), (1, 1), (1, 1)), constant_values=1.0)
    w_oihw = jnp.transpose(weight, (3, 2, 0, 1))       # HWIO -> OIHW
    out = lax.conv_general_dilated(
        x_pad, w_oihw, window_strides=(1, 1), padding="VALID",
        dimension_numbers=("NCHW", "OIHW", "NCHW"))
    out = out + bias.reshape(1, -1, 1, 1)
    out = out * jnp.exp(log_scale.reshape(1, -1, 1, 1) * 3.0)
    return out


if __name__ == "__main__":
    key = jax.random.PRNGKey(0)
    k_x, k_w, k_b, k_s, k_x3 = jax.random.split(key, 5)

    N, Cin, H, W = 2, 4, 16, 16
    Cout = 8

    x = jax.random.normal(k_x, (N, Cin, H, W), dtype=jnp.float32)
    # NOTE: the module's __init__ zero-initializes weight/bias/log_scale (true
    # initial output is all zeros).  Small random values are used so the kernel
    # math is exercised; shapes match nn.Conv2d(Cin, Cout, 3) + (1,Cout,1,1).
    weight = 0.1 * jax.random.normal(k_w, (3, 3, Cin, Cout), dtype=jnp.float32)
    bias = 0.1 * jax.random.normal(k_b, (Cout,), dtype=jnp.float32)
    log_scale = 0.1 * jax.random.normal(k_s, (Cout,), dtype=jnp.float32)

    ref = jax.block_until_ready(_reference(x, weight, bias, log_scale))

    # f32 streaming (default, exact)
    out = jax.block_until_ready(zero_conv2d(x, weight, bias, log_scale))
    assert out.shape == (N, Cout, H, W)
    assert jnp.allclose(out, ref, atol=1e-3, rtol=1e-3), "f32 mismatch vs reference"

    # bf16 streaming (review item: halve HBM bytes), validated at bf16 tolerance
    out_bf = jax.block_until_ready(
        zero_conv2d(x, weight, bias, log_scale, compute_dtype=jnp.bfloat16))
    assert jnp.allclose(out_bf, ref, atol=3e-2, rtol=3e-2), "bf16 mismatch vs reference"

    # batch that does not divide the block -> exercises the padded-batch path
    x3 = jax.random.normal(k_x3, (3, Cin, H, W), dtype=jnp.float32)
    out3 = jax.block_until_ready(
        zero_conv2d(x3, weight, bias, log_scale, max_batch_block=2))
    ref3 = jax.block_until_ready(_reference(x3, weight, bias, log_scale))
    assert out3.shape == (3, Cout, H, W)
    assert jnp.allclose(out3, ref3, atol=1e-3, rtol=1e-3), "padded-batch mismatch"

    # exact __init__ state of the module: all-zero params -> all-zero output
    z = jnp.zeros_like
    out0 = jax.block_until_ready(
        zero_conv2d(x, z(weight), z(bias), z(log_scale)))
    assert jnp.allclose(out0, 0.0)

    print("KERNEL_OK")
</pallas_src>

<mosaic_0001>
module attributes {stable_mosaic.version = 11 : i64} {
  func.func @_zero_conv2d_kernel(%arg0: i32, %arg1: memref<4x768xf32, #tpu.memory_space<vmem>>, %arg2: memref<72x4xf32, #tpu.memory_space<vmem>>, %arg3: memref<8x1xf32, #tpu.memory_space<vmem>>, %arg4: memref<8x768xf32, #tpu.memory_space<vmem>>, %arg5: memref<72x768xf32, #tpu.memory_space<vmem>>) attributes {dimension_semantics = [#tpu.dimension_semantics<parallel>], iteration_bounds = array<i64: 1>, scalar_prefetch = 0 : i64, scratch_operands = 1 : i64, tpu.core_type = #tpu.core_type<tc>, window_params = [{transform_indices = @transform_0, window_bounds = array<i64: 4, 768>}, {pipeline_mode = #tpu.pipeline_mode<synchronous>, transform_indices = @transform_1, window_bounds = array<i64: 72, 4>}, {pipeline_mode = #tpu.pipeline_mode<synchronous>, transform_indices = @transform_2, window_bounds = array<i64: 8, 1>}, {transform_indices = @transform_3, window_bounds = array<i64: 8, 768>}]} {
    %c0 = arith.constant 0 : index
    %c0_0 = arith.constant 0 : index
    %0 = vector.load %arg2[%c0, %c0_0] : memref<72x4xf32, #tpu.memory_space<vmem>>, vector<72x4xf32>
    %c0_1 = arith.constant 0 : index
    %c0_2 = arith.constant 0 : index
    %1 = vector.load %arg1[%c0_1, %c0_2] : memref<4x768xf32, #tpu.memory_space<vmem>>, vector<4x768xf32>
    %cst = arith.constant dense<0.000000e+00> : vector<72x768xf32>
    %2 = tpu.matmul %0, %1, %cst {dimension_numbers = #tpu.dot_dimension_numbers<[1], [0], [0], [1], [0, 0, 1, 1], [], []>} : vector<72x4xf32>, vector<4x768xf32>, vector<72x768xf32> -> vector<72x768xf32>
    %c0_3 = arith.constant 0 : index
    %c0_4 = arith.constant 0 : index
    %3 = vector.load %arg5[%c0_3, %c0_4] : memref<72x768xf32, #tpu.memory_space<vmem>>, vector<72x768xf32>
    tpu.vector_store %arg5[%c0_3, %c0_4], %2 {strides = array<i32>} : memref<72x768xf32, #tpu.memory_space<vmem>>, vector<72x768xf32>,
    %c0_5 = arith.constant 0 : index
    %c0_6 = arith.constant 0 : index
    %4 = vector.load %arg5[%c0_5, %c0_6] : memref<72x768xf32, #tpu.memory_space<vmem>>, vector<8x730xf32>
    %c8 = arith.constant 8 : index
    %c1 = arith.constant 1 : index
    %5 = vector.load %arg5[%c8, %c1] : memref<72x768xf32, #tpu.memory_space<vmem>>, vector<8x730xf32>
    %6 = arith.addf %4, %5 : vector<8x730xf32>
    %c16 = arith.constant 16 : index
    %c2 = arith.constant 2 : index
    %7 = vector.load %arg5[%c16, %c2] : memref<72x768xf32, #tpu.memory_space<vmem>>, vector<8x730xf32>
    %8 = arith.addf %6, %7 : vector<8x730xf32>
    %c24 = arith.constant 24 : index
    %c18 = arith.constant 18 : index
    %9 = vector.load %arg5[%c24, %c18] : memref<72x768xf32, #tpu.memory_space<vmem>>, vector<8x730xf32>
    %10 = arith.addf %8, %9 : vector<8x730xf32>
    %c32 = arith.constant 32 : index
    %c19 = arith.constant 19 : index
    %11 = vector.load %arg5[%c32, %c19] : memref<72x768xf32, #tpu.memory_space<vmem>>, vector<8x730xf32>
    %12 = arith.addf %10, %11 : vector<8x730xf32>
    %c40 = arith.constant 40 : index
    %c20 = arith.constant 20 : index
    %13 = vector.load %arg5[%c40, %c20] : memref<72x768xf32, #tpu.memory_space<vmem>>, vector<8x730xf32>
    %14 = arith.addf %12, %13 : vector<8x730xf32>
    %c48 = arith.constant 48 : index
    %c36 = arith.constant 36 : index
    %15 = vector.load %arg5[%c48, %c36] : memref<72x768xf32, #tpu.memory_space<vmem>>, vector<8x730xf32>
    %16 = arith.addf %14, %15 : vector<8x730xf32>
    %c56 = arith.constant 56 : index
    %c37 = arith.constant 37 : index
    %17 = vector.load %arg5[%c56, %c37] : memref<72x768xf32, #tpu.memory_space<vmem>>, vector<8x730xf32>
    %18 = arith.addf %16, %17 : vector<8x730xf32>
    %c64 = arith.constant 64 : index
    %c38 = arith.constant 38 : index
    %19 = vector.load %arg5[%c64, %c38] : memref<72x768xf32, #tpu.memory_space<vmem>>, vector<8x730xf32>
    %20 = arith.addf %18, %19 : vector<8x730xf32>
    %c0_7 = arith.constant 0 : index
    %c0_8 = arith.constant 0 : index
    %21 = vector.load %arg3[%c0_7, %c0_8] : memref<8x1xf32, #tpu.memory_space<vmem>>, vector<8x1xf32>
    %22 = vector.broadcast %21 : vector<8x1xf32> to vector<8x730xf32>
    %23 = arith.addf %20, %22 : vector<8x730xf32>
    %cst_9 = arith.constant 0.000000e+00 : f32
    %24 = vector.broadcast %cst_9 : f32 to vector<8x768xf32>
    %c0_10 = arith.constant 0 : index
    %c0_11 = arith.constant 0 : index
    %25 = vector.load %arg4[%c0_10, %c0_11] : memref<8x768xf32, #tpu.memory_space<vmem>>, vector<8x768xf32>
    tpu.vector_store %arg4[%c0_10, %c0_11], %24 {strides = array<i32>} : memref<8x768xf32, #tpu.memory_space<vmem>>, vector<8x768xf32>,
    %c0_12 = arith.constant 0 : index
    %c19_13 = arith.constant 19 : index
    %26 = vector.load %arg4[%c0_12, %c19_13] : memref<8x768xf32, #tpu.memory_space<vmem>>, vector<8x730xf32>
    tpu.vector_store %arg4[%c0_12, %c19_13], %23 {strides = array<i32>} : memref<8x768xf32, #tpu.memory_space<vmem>>, vector<8x730xf32>,
    return
  }
  func.func @transform_0(%arg0: i32) -> (i32, i32) {
    %c0_i32 = arith.constant 0 : i32
    %c0_i32_0 = arith.constant 0 : i32
    return %c0_i32, %arg0 : i32, i32
  }
  func.func @transform_1(%arg0: i32) -> (i32, i32) {
    %c0_i32 = arith.constant 0 : i32
    %c0_i32_0 = arith.constant 0 : i32
    %c0_i32_1 = arith.constant 0 : i32
    return %c0_i32, %c0_i32_0 : i32, i32
  }
  func.func @transform_2(%arg0: i32) -> (i32, i32) {
    %c0_i32 = arith.constant 0 : i32
    %c0_i32_0 = arith.constant 0 : i32
    %c0_i32_1 = arith.constant 0 : i32
    return %c0_i32, %c0_i32_0 : i32, i32
  }
  func.func @transform_3(%arg0: i32) -> (i32, i32) {
    %c0_i32 = arith.constant 0 : i32
    %c0_i32_0 = arith.constant 0 : i32
    return %c0_i32, %arg0 : i32, i32
  }
}

</mosaic_0001>

<bundles_post_ra>
// kernel: zero_conv2d.1
= control target key start
LH: loop header
LB: loop body
LE: loop exit
PB: predicated region body
PF: predicated region fallthrough
CT: control target
= control target key end

     0   :  { %vm68_vm0 = vcmask 1043456   ;;  %vm40_vm1 = vcmask 31744   ;;  %s875_s8 = smov 92   ;;  %s876_s9 = smov 127   ;;  %v882_v57 = vmov 0   ;;  %vm429_vm2 = vcmask 1039360   ;;  %s1186_s0 = inlined_call_operand.vmem [shape: f32[4,768], index: 0, kind: input, shape index: {}]   ;;  %s1187_s1 = inlined_call_operand.vmem [shape: f32[72,4], index: 1, kind: input, shape index: {}]   ;;  %s1188_s2 = inlined_call_operand.vmem [shape: f32[8,1], index: 2, kind: input, shape index: {}]   ;;  %s1189_s3 = inlined_call_operand.vmem [shape: f32[8,768], index: 3, kind: output, shape index: {}]  }
   0x1   :  { %v23_v0 = vld [vmem:[%s1186_s0] sm:$0xff]  ;;  %v25_v1 = vld [vmem:[%s1186_s0 + $0x10] sm:$0xff]  ;;  %v24_v2 = vld [vmem:[%s1186_s0 + $0x8] sm:$0xff]  ;;  %s877_s10 = smov 126   ;;  %s878_s11 = smov 91   ;;  %873 = vset.pattern.permute.xlu0 %v882_v57  ;;  %vm471_vm3 = vcmask 1031168  }
   0x2   :  { %29 = vst [vmem:[#allocation1] ss:$2 sm:$0xff] %v23_v0  ;;  %v14_v3 = vld [vmem:[%s1187_s1] sm:$0xff]  ;;  %v920_v4 = vld [vmem:[%s1187_s1 + $0x28] sm:$0xff]  ;;  %v20_v12 = vld [vmem:[%s1187_s1 + $0x30] sm:$0xff]  ;;  %s879_s12 = smov 110  }
   0x3   :  { %33 = vst [vmem:[#allocation1 + $0x20] ss:$2 sm:$0xff] %v25_v1  ;;  %v15_v11 = vld [vmem:[%s1187_s1 + $0x8] sm:$0xff]  ;;  %v16_v13 = vld [vmem:[%s1187_s1 + $0x10] sm:$0xff]  ;;  %v21_v14 = vld [vmem:[%s1187_s1 + $0x38] sm:$0xff]  ;;  %s880_s13 = smov 90  }
   0x4   :  { %31 = vst [vmem:[#allocation1 + $0x10] ss:$2 sm:$0xff] %v24_v2  ;;  %v17_v15 = vld [vmem:[%s1187_s1 + $0x18] sm:$0xff]  ;;  %v22_v16 = vld [vmem:[%s1187_s1 + $0x40] sm:$0xff]  ;;  %s881_s14 = smov 109   ;;  %vm513_vm4 = vcmask 900096  }
   0x5   :  { %v18_v17 = vld [vmem:[%s1187_s1 + $0x20] sm:$0xff]  ;;  %s874_s1 = smov 108   ;;  %vm555_vm5 = vcmask 891904   ;;  %vm597_vm6 = vcmask 883712   ;;  %vm639_vm7 = vcmask 752640   ;;  %vm681_vm8 = vcmask 744448  }
   0x6   :  { %vm723_vm9 = vcmask 736256   ;;  %vm777_vm10 = vcmask 154624   ;;  %vm789_vm11 = vcmask 1047704  }
   0x9   :  { %v34_v5 = vld.sshfl [vmem:[#allocation1] sm:$0xff pattern:$0x75316420]  ;;  %v35_v6 = vld.sshfl [vmem:[#allocation1 + $0x8] sm:$0xff pattern:$0x75316420] }
   0xa   :  { %800 = vmatpush.msk.msra.mxu0 %vm68_vm0, %v34_v5  ;;  %860 = vmatpush.msk.msra.mxu2 %vm68_vm0, %v34_v5  ;;  %v38_v7 = vld.sshfl [vmem:[#allocation1 + $0x20] sm:$0xff pattern:$0x75316420]  ;;  %v39_v9 = vld.sshfl [vmem:[#allocation1 + $0x28] sm:$0xff pattern:$0x75316420] }
   0xb   :  { %861 = vmatpush.msk.msra.mxu3 %vm68_vm0, %v35_v6  ;;  %801 = vmatmul.msk.f32.vlgmr.msra.gmra.mxu0 %vm40_vm1, %v14_v3  ;;  %v36_v8 = vld.sshfl [vmem:[#allocation1 + $0x10] sm:$0xff pattern:$0x75316420]  ;;  %v37_v10 = vld.sshfl [vmem:[#allocation1 + $0x18] sm:$0xff pattern:$0x75316420] }
   0xc   :  { %806 = vmatmul.msk.f32.vlgmr.msra.gmra.mxu2 %vm40_vm1, %v920_v4  ;;  %816 = vmatmul.msk.f32.vlgmr.msra.gmra.mxu3 %vm40_vm1, %v920_v4 }
   0xd   :  { %840 = vmatpush.msk.msrb.mxu0 %vm68_vm0, %v38_v7  ;;  %810 = vmatpush.msk.msra.mxu1 %vm68_vm0, %v35_v6 }
   0xe   :  { %811 = vmatmul.msk.f32.vlgmr.msra.gmra.mxu1 %vm40_vm1, %v14_v3  ;;  %820 = vmatpush.msk.msrb.mxu2 %vm68_vm0, %v36_v8  ;;  %v741_v8 = vld [vmem:[%s1188_s2] sm:$0xff]  ;;  %s883_s2 = smov 19  }
   0xf   :  { %850 = vmatpush.msk.msrb.mxu1 %vm68_vm0, %v39_v9  ;;  %830 = vmatpush.msk.msrb.mxu3 %vm68_vm0, %v37_v10 }
  0x13   :  { %802 = vmatmul.msk.f32.gmra.mxu0 %vm40_vm1, %v15_v11 }
  0x14   :  { %817 = vmatmul.msk.f32.gmra.mxu3 %vm40_vm1, %v20_v12  ;;  %807 = vmatmul.msk.f32.gmra.mxu2 %vm40_vm1, %v20_v12 }
  0x16   :  { %812 = vmatmul.msk.f32.gmra.mxu1 %vm40_vm1, %v15_v11 }
  0x1b   :  { %803 = vmatmul.msk.f32.gmra.mxu0 %vm40_vm1, %v16_v13 }
  0x1c   :  { %818 = vmatmul.msk.f32.gmra.mxu3 %vm40_vm1, %v21_v14  ;;  %808 = vmatmul.msk.f32.gmra.mxu2 %vm40_vm1, %v21_v14 }
  0x1e   :  { %813 = vmatmul.msk.f32.gmra.mxu1 %vm40_vm1, %v16_v13 }
  0x23   :  { %804 = vmatmul.msk.f32.gmra.mxu0 %vm40_vm1, %v17_v15 }
  0x24   :  { %809 = vmatmul.msk.f32.gmra.mxu2 %vm40_vm1, %v22_v16  ;;  %819 = vmatmul.msk.f32.gmra.mxu3 %vm40_vm1, %v22_v16 }
  0x26   :  { %814 = vmatmul.msk.f32.gmra.mxu1 %vm40_vm1, %v17_v15 }
  0x2b   :  { %805 = vmatmul.msk.f32.gmra.mxu0 %vm40_vm1, %v18_v17 }
  0x2c   :  { %821 = vmatmul.msk.f32.vlgmr.msrb.gmra.mxu2 %vm40_vm1, %v14_v3  ;;  %831 = vmatmul.msk.f32.vlgmr.msrb.gmra.mxu3 %vm40_vm1, %v14_v3 }
  0x2e   :  { %815 = vmatmul.msk.f32.gmra.mxu1 %vm40_vm1, %v18_v17 }
  0x33   :  { %841 = vmatmul.msk.f32.vlgmr.msrb.gmra.mxu0 %vm40_vm1, %v14_v3 }
  0x34   :  { %822 = vmatmul.msk.f32.gmra.mxu2 %vm40_vm1, %v15_v11  ;;  %832 = vmatmul.msk.f32.gmra.mxu3 %vm40_vm1, %v15_v11 }
  0x36   :  { %851 = vmatmul.msk.f32.vlgmr.msrb.gmra.mxu1 %vm40_vm1, %v14_v3 }
  0x3b   :  { %842 = vmatmul.msk.f32.gmra.mxu0 %vm40_vm1, %v15_v11 }
  0x3c   :  { %823 = vmatmul.msk.f32.gmra.mxu2 %vm40_vm1, %v16_v13  ;;  %833 = vmatmul.msk.f32.gmra.mxu3 %vm40_vm1, %v16_v13 }
  0x3e   :  { %852 = vmatmul.msk.f32.gmra.mxu1 %vm40_vm1, %v15_v11 }
  0x43   :  { %843 = vmatmul.msk.f32.gmra.mxu0 %vm40_vm1, %v16_v13 }
  0x44   :  { %824 = vmatmul.msk.f32.gmra.mxu2 %vm40_vm1, %v17_v15  ;;  %834 = vmatmul.msk.f32.gmra.mxu3 %vm40_vm1, %v17_v15 }
  0x46   :  { %853 = vmatmul.msk.f32.gmra.mxu1 %vm40_vm1, %v16_v13 }
  0x4b   :  { %844 = vmatmul.msk.f32.gmra.mxu0 %vm40_vm1, %v17_v15 }
  0x4c   :  { %835 = vmatmul.msk.f32.gmra.mxu3 %vm40_vm1, %v18_v17  ;;  %825 = vmatmul.msk.f32.gmra.mxu2 %vm40_vm1, %v18_v17 }
  0x4e   :  { %854 = vmatmul.msk.f32.gmra.mxu1 %vm40_vm1, %v17_v15 }
  0x53   :  { %845 = vmatmul.msk.f32.gmra.mxu0 %vm40_vm1, %v18_v17 }
  0x54   :  { %836 = vmatmul.msk.f32.gmra.mxu3 %vm40_vm1, %v920_v4  ;;  %826 = vmatmul.msk.f32.gmra.mxu2 %vm40_vm1, %v920_v4 }
  0x56   :  { %855 = vmatmul.msk.f32.gmra.mxu1 %vm40_vm1, %v18_v17 }
  0x5b   :  { %846 = vmatmul.msk.f32.gmra.mxu0 %vm40_vm1, %v920_v4 }
  0x5c   :  { %837 = vmatmul.msk.f32.gmra.mxu3 %vm40_vm1, %v20_v12  ;;  %827 = vmatmul.msk.f32.gmra.mxu2 %vm40_vm1, %v20_v12 }
  0x5e   :  { %856 = vmatmul.msk.f32.gmra.mxu1 %vm40_vm1, %v920_v4 }
  0x63   :  { %847 = vmatmul.msk.f32.gmra.mxu0 %vm40_vm1, %v20_v12 }
  0x64   :  { %838 = vmatmul.msk.f32.gmra.mxu3 %vm40_vm1, %v21_v14  ;;  %828 = vmatmul.msk.f32.gmra.mxu2 %vm40_vm1, %v21_v14 }
  0x66   :  { %857 = vmatmul.msk.f32.gmra.mxu1 %vm40_vm1, %v20_v12 }
  0x6b   :  { %848 = vmatmul.msk.f32.gmra.mxu0 %vm40_vm1, %v21_v14 }
  0x6c   :  { %839 = vmatmul.msk.f32.gmra.mxu3 %vm40_vm1, %v22_v16  ;;  %829 = vmatmul.msk.f32.gmra.mxu2 %vm40_vm1, %v22_v16 }
  0x6e   :  { %858 = vmatmul.msk.f32.gmra.mxu1 %vm40_vm1, %v21_v14 }
  0x73   :  { %849 = vmatmul.msk.f32.gmra.mxu0 %vm40_vm1, %v22_v16 }
  0x76   :  { %859 = vmatmul.msk.f32.gmra.mxu1 %vm40_vm1, %v22_v16 }
  0x88   :  { %v1011_v18 = vpop.f32.mrf.mxu0 }
  0x8b   :  { %v1013_v19 = vpop.f32.mrf.mxu1 }
  0x8f   :  { %v113_v20 = vpop.f32.mrf.mxu2  ;;  %v157_v21 = vpop.f32.mrf.mxu3 }
  0x90   :  { %587 = vrot.lane.b32.xlu1 %v157_v21, %s874_s1  ;;  %585 = vrot.lane.b32.xlu0 %v113_v20, %s874_s1  ;;  %v101_v22 = vpop.f32.mrf.mxu0 }
  0x93   :  { %v145_v23 = vpop.f32.mrf.mxu1 }
  0x97   :  { %v160_v24 = vpop.f32.mrf.mxu3  ;;  %v116_v25 = vpop.f32.mrf.mxu2 }
  0x98   :  { %629 = vrot.lane.b32.xlu1 %v160_v24, %s875_s8  ;;  %417 = vrot.lane.b32.xlu0 %v101_v22, %s876_s9  ;;  %v104_v26 = vpop.f32.mrf.mxu0 }
  0x9b   :  { %v148_v27 = vpop.f32.mrf.mxu1 }
  0x9f   :  { %v119_v28 = vpop.f32.mrf.mxu2  ;;  %v163_v31 = vpop.f32.mrf.mxu3 }
  0xa0   :  { %461 = vrot.lane.b32.xlu1 %v148_v27, %s877_s10  ;;  %419 = vrot.lane.b32.xlu0 %v145_v23, %s876_s9  ;;  %v107_v29 = vpop.f32.mrf.mxu0 }
  0xa3   :  { %v151_v30 = vpop.f32.mrf.mxu1 }
  0xa7   :  { %v122_v33 = vpop.f32.mrf.mxu2  ;;  %v166_v35 = vpop.f32.mrf.mxu3 }
  0xa8   :  { %671 = vrot.lane.b32.xlu1 %v163_v31, %s878_s11  ;;  %627 = vrot.lane.b32.xlu0 %v116_v25, %s875_s8  ;;  %v110_v32 = vpop.f32.mrf.mxu0 }
  0xab   :  { %v154_v34 = vpop.f32.mrf.mxu1 }
  0xaf   :  { %v1027_v37 = vpop.f32.mrf.mxu2  ;;  %v1031_v39 = vpop.f32.mrf.mxu3 }
  0xb0   :  { %503 = vrot.lane.b32.xlu1 %v151_v30, %s879_s12  ;;  %459 = vrot.lane.b32.xlu0 %v104_v26, %s877_s10  ;;  %v1025_v36 = vpop.f32.mrf.mxu0 }
  0xb3   :  { %v1029_v38 = vpop.f32.mrf.mxu1 }
  0xb7   :  { %v189_v41 = vpop.f32.mrf.mxu2  ;;  %v233_v43 = vpop.f32.mrf.mxu3 }
  0xb8   :  { %713 = vrot.lane.b32.xlu1 %v166_v35, %s880_s13  ;;  %669 = vrot.lane.b32.xlu0 %v119_v28, %s878_s11  ;;  %v277_v40 = vpop.f32.mrf.mxu0 }
  0xb9   :  { %425 = vrot.lane.b32.xlu2 %v277_v40, %s876_s9 }
  0xbb   :  { %v321_v42 = vpop.f32.mrf.mxu1 }
  0xbf   :  { %v192_v44 = vpop.f32.mrf.mxu2  ;;  %v236_v45 = vpop.f32.mrf.mxu3 }
  0xc0   :  { %545 = vrot.lane.b32.xlu1 %v154_v34, %s881_s14  ;;  %501 = vrot.lane.b32.xlu0 %v107_v29, %s879_s12  ;;  %v280_v46 = vpop.f32.mrf.mxu0 }
  0xc1   :  { %427 = vrot.lane.b32.xlu2 %v321_v42, %s876_s9 }
  0xc3   :  { %v324_v47 = vpop.f32.mrf.mxu1 }
  0xc7   :  { %v239_v48 = vpop.f32.mrf.mxu3  ;;  %v195_v50 = vpop.f32.mrf.mxu2 }
  0xc8   :  { %421 = vrot.lane.b32.xlu1 %v189_v41, %s876_s9  ;;  %711 = vrot.lane.b32.xlu0 %v122_v33, %s880_s13  ;;  %v283_v49 = vpop.f32.mrf.mxu0 }
  0xc9   :  { %463 = vrot.lane.b32.xlu2 %v192_v44, %s877_s10 }
  0xcb   :  { %v327_v53 = vpop.f32.mrf.mxu1 }
  0xcf   :  { %v242_v51 = vpop.f32.mrf.mxu3  ;;  %v198_v54 = vpop.f32.mrf.mxu2 }
  0xd0   :  { %423 = vrot.lane.b32.xlu1 %v233_v43, %s876_s9  ;;  %543 = vrot.lane.b32.xlu0 %v110_v32, %s881_s14  ;;  %v286_v52 = vpop.f32.mrf.mxu0 }
  0xd1   :  { %469 = vrot.lane.b32.xlu2 %v324_v47, %s877_s10 }
  0xd3   :  { %v330_v58 = vpop.f32.mrf.mxu1 }
  0xd7   :  { %v245_v55 = vpop.f32.mrf.mxu3  ;;  %v201_v61 = vpop.f32.mrf.mxu2 }
  0xd8   :  { %465 = vrot.lane.b32.xlu0 %v236_v45, %s877_s10  ;;  %467 = vrot.lane.b32.xlu1 %v280_v46, %s877_s10  ;;  %v289_v56 = vpop.f32.mrf.mxu0 }
  0xd9   :  { %505 = vrot.lane.b32.xlu2 %v195_v50, %s879_s12 }
  0xdb   :  { %v333_v0 = vpop.f32.mrf.mxu1 }
  0xdf   :  { %v248_v59 = vpop.f32.mrf.mxu3  ;;  %v204_v5 = vpop.f32.mrf.mxu2 }
  0xe0   :  { %507 = vrot.lane.b32.xlu0 %v239_v48, %s879_s12  ;;  %509 = vrot.lane.b32.xlu1 %v283_v49, %s879_s12  ;;  %v292_v60 = vpop.f32.mrf.mxu0 }
  0xe1   :  { %511 = vrot.lane.b32.xlu2 %v327_v53, %s879_s12 }
  0xe3   :  { %v336_v9 = vpop.f32.mrf.mxu1 }
  0xe7   :  { %v251_v62 = vpop.f32.mrf.mxu3  ;;  %v207_v14 = vpop.f32.mrf.mxu2 }
  0xe8   :  { %549 = vrot.lane.b32.xlu0 %v242_v51, %s881_s14  ;;  %551 = vrot.lane.b32.xlu1 %v286_v52, %s881_s14  ;;  %v295_v63 = vpop.f32.mrf.mxu0 }
  0xe9   :  { %547 = vrot.lane.b32.xlu2 %v198_v54, %s881_s14 }
  0xeb   :  { %v339_v21 = vpop.f32.mrf.mxu1 }
  0xef   :  { %v254_v3 = vpop.f32.mrf.mxu3  ;;  %v210_v29 = vpop.f32.mrf.mxu2 }
  0xf0   :  { %591 = vrot.lane.b32.xlu0 %v245_v55, %s874_s1  ;;  %593 = vrot.lane.b32.xlu1 %v289_v56, %s874_s1  ;;  %v298_v4 = vpop.f32.mrf.mxu0 }
  0xf1   :  { %553 = vrot.lane.b32.xlu2 %v330_v58, %s881_s14 }
  0xf3   :  { %v342_v35 = vpop.f32.mrf.mxu1 }
  0xf8   :  { %633 = vrot.lane.b32.xlu0 %v248_v59, %s875_s8  ;;  %635 = vrot.lane.b32.xlu1 %v292_v60, %s875_s8 }
  0xf9   :  { %589 = vrot.lane.b32.xlu2 %v201_v61, %s874_s1 }
 0x100   :  { %675 = vrot.lane.b32.xlu0 %v251_v62, %s878_s11  ;;  %677 = vrot.lane.b32.xlu1 %v295_v63, %s878_s11 }
 0x101   :  { %595 = vrot.lane.b32.xlu2 %v333_v0, %s874_s1 }
 0x102   :  { %v1063_v1 = vpop.permute.xlu1 %587  ;;  %v1065_v2 = vpop.permute.xlu0 %585 }
 0x103   :  { %v598_v57 = vsel %vm597_vm6, %v1065_v2, %v1063_v1 }
 0x108   :  { %717 = vrot.lane.b32.xlu0 %v254_v3, %s880_s13  ;;  %719 = vrot.lane.b32.xlu1 %v298_v4, %s880_s13 }
 0x109   :  { %631 = vrot.lane.b32.xlu2 %v204_v5, %s875_s8 }
 0x10a   :  { %v1070_v6 = vpop.permute.xlu1 %629  ;;  %v418_v7 = vpop.permute.xlu0 %417 }
 0x110   :  { %744 = vperm.xlu0 %873, %v741_v8  }
 0x111   :  { %637 = vrot.lane.b32.xlu2 %v336_v9, %s875_s8 }
 0x112   :  { %v462_v10 = vpop.permute.xlu1 %461  ;;  %v420_v11 = vpop.permute.xlu0 %419 }
 0x113   :  { %v430_v12 = vsel %vm429_vm2, %v418_v7, %v420_v11  ;;  %v1077_v13 = vpop.permute.xlu2 %425 }
 0x114   :  { %v441_v22 = vadd.f32 %v430_v12, %v1011_v18 }
 0x119   :  { %673 = vrot.lane.b32.xlu2 %v207_v14, %s878_s11 }
 0x11a   :  { %v1080_v15 = vpop.permute.xlu1 %671  ;;  %v628_v16 = vpop.permute.xlu0 %627 }
 0x11b   :  { %v428_v17 = vpop.permute.xlu2 %427 }
 0x11c   :  { %v434_v20 = vsel %vm429_vm2, %v1077_v13, %v428_v17  ;;  %v446_v30 = vadd.f32 %v428_v17, %v1029_v38 }
 0x11d   :  { %v445_v61 = vadd.f32 %v434_v20, %v1025_v36 }
 0x121   :  { %679 = vrot.lane.b32.xlu2 %v339_v21, %s878_s11 }
 0x122   :  { %v504_v23 = vpop.permute.xlu1 %503  ;;  %v460_v24 = vpop.permute.xlu0 %459 }
 0x123   :  { %v472_v25 = vsel %vm471_vm3, %v460_v24, %v462_v10  ;;  %v464_v26 = vpop.permute.xlu2 %463 }
 0x124   :  { %v483_v27 = vadd.f32 %v472_v25, %v441_v22  ;;  %v473_v28 = vsel %vm471_vm3, %v462_v10, %v464_v26 }
 0x129   :  { %715 = vrot.lane.b32.xlu2 %v210_v29, %s880_s13 }
 0x12a   :  { %v1090_v31 = vpop.permute.xlu1 %713  ;;  %v670_v32 = vpop.permute.xlu0 %669 }
 0x12b   :  { %v470_v33 = vpop.permute.xlu2 %469  ;;  %v682_v60 = vsel %vm681_vm8, %v670_v32, %v1080_v15 }
 0x12c   :  { %v488_v34 = vadd.f32 %v470_v33, %v446_v30 }
 0x131   :  { %721 = vrot.lane.b32.xlu2 %v342_v35, %s880_s13 }
 0x132   :  { %v546_v18 = vpop.permute.xlu1 %545  ;;  %v502_v40 = vpop.permute.xlu0 %501 }
 0x133   :  { %v514_v41 = vsel %vm513_vm4, %v502_v40, %v504_v23  ;;  %v506_v42 = vpop.permute.xlu2 %505 }
 0x134   :  { %v525_v43 = vadd.f32 %v514_v41, %v483_v27  ;;  %v515_v44 = vsel %vm513_vm4, %v504_v23, %v506_v42 }
 0x13a   :  { %v422_v45 = vpop.permute.xlu1 %421  ;;  %v712_v46 = vpop.permute.xlu0 %711 }
 0x13b   :  { %v431_v38 = vsel %vm429_vm2, %v420_v11, %v422_v45  ;;  %v512_v47 = vpop.permute.xlu2 %511  ;;  %v724_v2 = vsel %vm723_vm9, %v712_v46, %v1090_v31 }
 0x13c   :  { %v442_v48 = vadd.f32 %v431_v38, %v1013_v19  ;;  %v1097_v49 = vadd.f32 %v512_v47, %v488_v34  ;;  %v640_v19 = vsel %vm639_vm7, %v628_v16, %v1070_v6 }
 0x13e   :  { %v484_v50 = vadd.f32 %v473_v28, %v442_v48 }
 0x140   :  { %v526_v51 = vadd.f32 %v515_v44, %v484_v50 }
 0x142   :  { %v424_v52 = vpop.permute.xlu1 %423  ;;  %v544_v53 = vpop.permute.xlu0 %543 }
 0x143   :  { %v556_v54 = vsel %vm555_vm5, %v544_v53, %v546_v18  ;;  %v548_v55 = vpop.permute.xlu2 %547  ;;  %v432_v7 = vsel %vm429_vm2, %v422_v45, %v424_v52  ;;  %v433_v40 = vsel %vm429_vm2, %v424_v52, %v1077_v13 }
 0x144   :  { %v567_v56 = vadd.f32 %v556_v54, %v525_v43  ;;  %v443_v10 = vadd.f32 %v432_v7, %v1027_v37 }
 0x146   :  { %v609_v58 = vadd.f32 %v598_v57, %v567_v56 }
 0x148   :  { %v651_v59 = vadd.f32 %v640_v19, %v609_v58 }
 0x14a   :  { %v466_v62 = vpop.permute.xlu0 %465  ;;  %v468_v63 = vpop.permute.xlu1 %467  ;;  %v693_v0 = vadd.f32 %v682_v60, %v651_v59 }
 0x14b   :  { %v476_v3 = vsel %vm471_vm3, %v468_v63, %v470_v33  ;;  %v1109_v4 = vpop.permute.xlu2 %553  ;;  %v474_v9 = vsel %vm471_vm3, %v464_v26, %v466_v62  ;;  %v557_v33 = vsel %vm555_vm5, %v546_v18, %v548_v55  ;;  %v475_v45 = vsel %vm471_vm3, %v466_v62, %v468_v63 }
 0x14c   :  { %v487_v5 = vadd.f32 %v476_v3, %v445_v61  ;;  %v735_v8 = vadd.f32 %v724_v2, %v693_v0  ;;  %v485_v11 = vadd.f32 %v474_v9, %v443_v10  ;;  %v568_v43 = vadd.f32 %v557_v33, %v526_v51 }
 0x14d   :  { %v444_v18 = vadd.f32 %v433_v40, %v1031_v39 }
 0x14f   :  { %v486_v51 = vadd.f32 %v475_v45, %v444_v18 }
 0x152   :  { %v508_v36 = vpop.permute.xlu0 %507  ;;  %v510_v12 = vpop.permute.xlu1 %509 }
 0x153   :  { %v516_v14 = vsel %vm513_vm4, %v506_v42, %v508_v36  ;;  %v518_v16 = vsel %vm513_vm4, %v510_v12, %v512_v47  ;;  %v590_v17 = vpop.permute.xlu2 %589  ;;  %v517_v13 = vsel %vm513_vm4, %v508_v36, %v510_v12 }
 0x154   :  { %v527_v20 = vadd.f32 %v516_v14, %v485_v11  ;;  %v529_v21 = vadd.f32 %v518_v16, %v487_v5  ;;  %v599_v41 = vsel %vm597_vm6, %v1063_v1, %v590_v17  ;;  %v528_v56 = vadd.f32 %v517_v13, %v486_v51 }
 0x155   :  { %v610_v47 = vadd.f32 %v599_v41, %v568_v43  ;;  %v572_v5 = vadd.f32 %v1109_v4, %v1097_v49 }
 0x15a   :  { %v550_v22 = vpop.permute.xlu0 %549  ;;  %v552_v24 = vpop.permute.xlu1 %551 }
 0x15b   :  { %v596_v23 = vpop.permute.xlu2 %595  ;;  %v558_v42 = vsel %vm555_vm5, %v548_v55, %v550_v22  ;;  %v559_v54 = vsel %vm555_vm5, %v550_v22, %v552_v24  ;;  %v560_v55 = vsel %vm555_vm5, %v552_v24, %v1109_v4 }
 0x15c   :  { %v569_v48 = vadd.f32 %v558_v42, %v527_v20  ;;  %v570_v63 = vadd.f32 %v559_v54, %v528_v56  ;;  %v571_v0 = vadd.f32 %v560_v55, %v529_v21  ;;  %v614_v16 = vadd.f32 %v596_v23, %v572_v5 }
 0x162   :  { %v592_v25 = vpop.permute.xlu0 %591  ;;  %v594_v28 = vpop.permute.xlu1 %593 }
 0x163   :  { %v632_v27 = vpop.permute.xlu2 %631  ;;  %v600_v46 = vsel %vm597_vm6, %v590_v17, %v592_v25  ;;  %v601_v60 = vsel %vm597_vm6, %v592_v25, %v594_v28 }
 0x164   :  { %v641_v38 = vsel %vm639_vm7, %v1070_v6, %v632_v27  ;;  %v611_v52 = vadd.f32 %v600_v46, %v569_v48  ;;  %v612_v9 = vadd.f32 %v601_v60, %v570_v63 }
 0x165   :  { %v652_v53 = vadd.f32 %v641_v38, %v610_v47 }
 0x16a   :  { %v634_v29 = vpop.permute.xlu0 %633  ;;  %v636_v37 = vpop.permute.xlu1 %635 }
 0x16b   :  { %v638_v26 = vpop.permute.xlu2 %637  ;;  %v642_v50 = vsel %vm639_vm7, %v632_v27, %v634_v29  ;;  %v643_v7 = vsel %vm639_vm7, %v634_v29, %v636_v37 }
 0x16c   :  { %v653_v57 = vadd.f32 %v642_v50, %v611_v52  ;;  %v654_v17 = vadd.f32 %v643_v7, %v612_v9  ;;  %v656_v4 = vadd.f32 %v638_v26, %v614_v16 }
 0x172   :  { %v676_v30 = vpop.permute.xlu0 %675  ;;  %v678_v44 = vpop.permute.xlu1 %677 }
 0x173   :  { %v674_v32 = vpop.permute.xlu2 %673  ;;  %v685_v12 = vsel %vm681_vm8, %v676_v30, %v678_v44 }
 0x174   :  { %v683_v1 = vsel %vm681_vm8, %v1080_v15, %v674_v32  ;;  %v684_v6 = vsel %vm681_vm8, %v674_v32, %v676_v30  ;;  %v602_v15 = vsel %vm597_vm6, %v594_v28, %v596_v23  ;;  %v696_v21 = vadd.f32 %v685_v12, %v654_v17 }
 0x175   :  { %v694_v58 = vadd.f32 %v683_v1, %v652_v53  ;;  %v695_v3 = vadd.f32 %v684_v6, %v653_v57  ;;  %v613_v10 = vadd.f32 %v602_v15, %v571_v0 }
 0x17a   :  { %v718_v34 = vpop.permute.xlu0 %717  ;;  %v720_v11 = vpop.permute.xlu1 %719 }
 0x17b   :  { %v680_v35 = vpop.permute.xlu2 %679  ;;  %v727_v49 = vsel %vm723_vm9, %v718_v34, %v720_v11 }
 0x17c   :  { %v686_v14 = vsel %vm681_vm8, %v678_v44, %v680_v35  ;;  %v738_v28 = vadd.f32 %v727_v49, %v696_v21  ;;  %v698_v29 = vadd.f32 %v680_v35, %v656_v4 }
 0x182   :  { %v745_v39 = vpop.permute.xlu0 %744 }
 0x183   :  { %v716_v19 = vpop.permute.xlu2 %715  ;;  %v747_v59 = vadd.f32 %v745_v39, %v735_v8  ;;  %v644_v8 = vsel %vm639_vm7, %v636_v37, %v638_v26  ;;  %v750_v32 = vadd.f32 %v745_v39, %v738_v28  ;;  %v884_v26 = vmov 0.0  }
 0x184   :  { %v725_v61 = vsel %vm723_vm9, %v1090_v31, %v716_v19  ;;  %v726_v62 = vsel %vm723_vm9, %v716_v19, %v718_v34  ;;  %v655_v20 = vadd.f32 %v644_v8, %v613_v10  ;;  %753 = vst [vmem:[%s1189_s3] sm:$0xff] %v884_v26 }
 0x185   :  { %v736_v2 = vadd.f32 %v725_v61, %v694_v58  ;;  %765 = vrot.lane.b32.xlu1 %v747_v59, %s883_s2  ;;  %v737_v31 = vadd.f32 %v726_v62, %v695_v3  ;;  %758 = vst [vmem:[%s1189_s3 + $0x28] sm:$0xff] %v884_v26 }
 0x186   :  { %v697_v22 = vadd.f32 %v686_v14, %v655_v20 }
 0x187   :  { %v748_v36 = vadd.f32 %v745_v39, %v736_v2  ;;  %v749_v25 = vadd.f32 %v745_v39, %v737_v31 }
 0x189   :  { %767 = vrot.lane.b32.xlu2 %v748_v36, %s883_s2 }
 0x18b   :  { %v722_v24 = vpop.permute.xlu2 %721 }
 0x18c   :  { %v728_v27 = vsel %vm723_vm9, %v720_v11, %v722_v24  ;;  %v740_v30 = vadd.f32 %v722_v24, %v698_v29 }
 0x18d   :  { %v739_v37 = vadd.f32 %v728_v27, %v697_v22  ;;  %769 = vrot.lane.b32.xlu1 %v749_v25, %s883_s2 }
 0x18e   :  { %v752_v33 = vadd.f32 %v745_v39, %v740_v30 }
 0x18f   :  { %v751_v23 = vadd.f32 %v745_v39, %v739_v37 }
 0x191   :  { %773 = vrot.lane.b32.xlu0 %v751_v23, %s883_s2  ;;  %771 = vrot.lane.b32.xlu2 %v750_v32, %s883_s2 }
 0x195   :  { %775 = vrot.lane.b32.xlu1 %v752_v33, %s883_s2 }
 0x1e3   :  { %v768_v34 = vpop.permute.xlu2 %767 }
 0x1eb   :  { %v772_v41 = vpop.permute.xlu2 %771 }
 0x1f7   :  { %v766_v35 = vpop.permute.xlu1 %765 }
 0x1f8   :  { %v778_v40 = vsel %vm777_vm10, %v766_v35, %v768_v34  ;;  %790 = vst.msk [vmem:[%s1189_s3] sm:$0xff] %vm789_vm11, %v766_v35 }
 0x1f9   :  { %791 = vst [vmem:[%s1189_s3 + $0x8] sm:$0xff] %v778_v40 }
 0x1ff   :  { %v770_v42 = vpop.permute.xlu1 %769 }
 0x200   :  { %v779_v43 = vsel %vm777_vm10, %v768_v34, %v770_v42  ;;  %v780_v44 = vsel %vm777_vm10, %v770_v42, %v772_v41 }
 0x201   :  { %792 = vst [vmem:[%s1189_s3 + $0x10] sm:$0xff] %v779_v43 }
 0x202   :  { %793 = vst [vmem:[%s1189_s3 + $0x18] sm:$0xff] %v780_v44 }
 0x203   :  { %v774_v45 = vpop.permute.xlu0 %773 }
 0x204   :  { %v781_v46 = vsel %vm777_vm10, %v772_v41, %v774_v45 }
 0x205   :  { %794 = vst [vmem:[%s1189_s3 + $0x20] sm:$0xff] %v781_v46 }
 0x207   :  { %v776_v38 = vpop.permute.xlu1 %775 }
 0x208   :  { %v782_v18 = vsel %vm777_vm10, %v774_v45, %v776_v38 }
 0x209   :  { %795 = vst.msk [vmem:[%s1189_s3 + $0x28] sm:$0xff] %vm555_vm5, %v782_v18 }

</bundles_post_ra>
